<compile_context>
chip_gen: v7x
topology: tpu7x:2x2x1
jax: 0.10.0
libtpu: 0.0.40
codegen_flags: <defaults>
</compile_context>

<pallas_src>
import jax
import jax.numpy as jnp
from jax.experimental import pallas as pl
from jax.experimental.pallas import tpu as pltpu


def _pick_batch_tile(N, d, lane_target=256):
    """Largest divisor TN of N with TN*d <= lane_target, preferring TN*d % 128 == 0."""
    divs = [t for t in range(1, N + 1) if N % t == 0 and t * d <= max(lane_target, d)]
    aligned = [t for t in divs if (t * d) % 128 == 0]
    return max(aligned) if aligned else max(divs)


def _make_kernel(TN, P, d):
    dd = d * d

    def kernel(xcat_ref, wbd_ref, e_ref, t_ref, bias_ref, o_ref):
        # One fused block-diagonal conv matmul:
        #   (2P, 2*C*d) @ (2*C*d, TN*d) -> (2P, TN*d), f32 accumulation.
        #   res[:P][p, t*d+i] = sum_{c,j} w1[p,c,j] * x[t,c,i,j]   (row conv)
        #   res[P:][p, t*d+j] = sum_{c,i} w2[p,c,i] * x[t,c,i,j]   (col conv)
        res = jnp.dot(wbd_ref[...], xcat_ref[...], preferred_element_type=jnp.float32)
        # Combined bias (b1 + b2) is added exactly once (both broadcast over the full
        # d x d output).  Cast to bf16 so the expansion dots stay on the bf16 MXU path.
        A = (res[:P] + bias_ref[...]).astype(jnp.bfloat16)   # (P, TN*d): a[t,p,i]+bias
        B = res[P:].astype(jnp.bfloat16)                     # (P, TN*d): b[t,p,j]

        # Lane-dense outer sum per batch element via shared 0/1 expansion matmuls:
        #   out_t[p, i*d + j] = A_t[p, i] + B_t[p, j]
        for t in range(TN):                                   # static unroll (TN small)
            a_t = A[:, t * d:(t + 1) * d]                     # (P, d)
            b_t = B[:, t * d:(t + 1) * d]                     # (P, d)
            out_t = (jnp.dot(a_t, e_ref[...], preferred_element_type=jnp.float32)
                     + jnp.dot(b_t, t_ref[...], preferred_element_type=jnp.float32))
            o_ref[t] = out_t.astype(o_ref.dtype)              # (P, d*d), unmasked store

    return kernel


def e2e_block(x, w1, b1, w2, b2, *, compute_dtype=jnp.bfloat16, batch_tile=None):
    """x: (N, C, d, d); w1: (P, C, 1, d); w2: (P, C, d, 1); b1, b2: (P,)."""
    N, C, d, d2 = x.shape
    assert d == d2, "E2EBlock expects square roi input (H == W == roi_num)"
    P = w1.shape[0]

    TN = batch_tile if batch_tile is not None else _pick_batch_tile(N, d)
    assert N % TN == 0
    G = N // TN
    CD = C * d
    dd = d * d

    # ---- wrapper-side layout glue (reshapes/transposes only, no compute) ----------
    xg = x.reshape(G, TN, C, d, d)
    # row-conv operand: X1[g, c*d+j, t*d+i] = x[g*TN+t, c, i, j]
    x1p = jnp.transpose(xg, (0, 2, 4, 1, 3)).reshape(G, CD, TN * d)
    # col-conv operand: X2[g, c*d+i, t*d+j] = x[g*TN+t, c, i, j]
    x2p = jnp.transpose(xg, (0, 2, 3, 1, 4)).reshape(G, CD, TN * d)
    # Single RHS for the fused block-diagonal matmul (contraction dim = 2*CD = 128).
    xcat = jnp.concatenate([x1p, x2p], axis=1).astype(compute_dtype)   # (G, 2*CD, TN*d)

    # Block-diagonal weights: [[w1f, 0], [0, w2f]] -> (2P, 2*CD).
    w1f = w1.reshape(P, CD).astype(jnp.float32)
    w2f = w2.reshape(P, CD).astype(jnp.float32)
    wbd = jnp.zeros((2 * P, 2 * CD), jnp.float32)
    wbd = wbd.at[:P, :CD].set(w1f).at[P:, CD:].set(w2f).astype(compute_dtype)

    bias = (b1 + b2).reshape(P, 1).astype(jnp.float32)

    # Shared 0/1 expansion matrices (exact in bf16):
    #   e_mat[i, i*d + j] = 1   (expands A over j)
    #   t_mat[j, i*d + j] = 1   (expands B over i)
    rows = jnp.arange(d)
    cols = jnp.arange(dd)
    e_mat = (rows[:, None] == (cols // d)[None, :]).astype(compute_dtype)   # (d, dd)
    t_mat = (rows[:, None] == (cols % d)[None, :]).astype(compute_dtype)    # (d, dd)

    # Explicit VMEM budget: double-buffered x/out blocks + (default-pipelined)
    # constants + headroom; clamped to stay within every generation's scoped limit.
    xcat_blk = 2 * CD * TN * d * xcat.dtype.itemsize
    out_blk = TN * P * dd * x.dtype.itemsize
    const_b = (wbd.size * wbd.dtype.itemsize + e_mat.size * e_mat.dtype.itemsize
               + t_mat.size * t_mat.dtype.itemsize + bias.size * bias.dtype.itemsize)
    vmem_budget = int(min(max(2 * (xcat_blk + out_blk) + 2 * const_b + (4 << 20),
                              8 << 20), 32 << 20))

    # Shard across TensorCores only when each step is lane-dense and there are >1 steps.
    parallel_grid = (G > 1) and (TN * d >= 128)

    grid_spec = pltpu.PrefetchScalarGridSpec(
        num_scalar_prefetch=0,
        grid=(G,),
        in_specs=[
            pl.BlockSpec((pl.Squeezed(), 2 * CD, TN * d), lambda g: (g, 0, 0)),  # concat(X1,X2)
            pl.BlockSpec((2 * P, 2 * CD), lambda g: (0, 0)),                     # block-diag W
            pl.BlockSpec((d, dd), lambda g: (0, 0)),                             # A expansion
            pl.BlockSpec((d, dd), lambda g: (0, 0)),                             # B expansion
            pl.BlockSpec((P, 1), lambda g: (0, 0)),                              # combined bias
        ],
        out_specs=pl.BlockSpec((TN, P, dd), lambda g: (g, 0, 0)),
    )

    out_flat = pl.pallas_call(
        _make_kernel(TN, P, d),
        out_shape=jax.ShapeDtypeStruct((N, P, dd), x.dtype),
        grid_spec=grid_spec,
        compiler_params=pltpu.CompilerParams(
            dimension_semantics=(("parallel",) if parallel_grid else ("arbitrary",)),
            vmem_limit_bytes=vmem_budget,
        ),
    )(xcat, wbd, e_mat, t_mat, bias)

    # Free, contiguous reshape back to the PyTorch NCHW output layout.
    return out_flat.reshape(N, P, d, d)


def e2e_block_reference(x, w1, b1, w2, b2, mimic_kernel=False):
    """Pure-JAX reference.  mimic_kernel=True reproduces the kernel's bf16 rounding."""
    w1k = w1[:, :, 0, :]
    w2k = w2[:, :, :, 0]
    if mimic_kernel:
        xb = x.astype(jnp.bfloat16)
        a = jnp.einsum("ncij,pcj->npi", xb, w1k.astype(jnp.bfloat16),
                       preferred_element_type=jnp.float32)
        b = jnp.einsum("ncij,pci->npj", xb, w2k.astype(jnp.bfloat16),
                       preferred_element_type=jnp.float32)
        a = (a + (b1 + b2)[None, :, None]).astype(jnp.bfloat16).astype(jnp.float32)
        b = b.astype(jnp.bfloat16).astype(jnp.float32)
    else:
        a = jnp.einsum("ncij,pcj->npi", x, w1k) + b1[None, :, None]
        b = jnp.einsum("ncij,pci->npj", x, w2k) + b2[None, :, None]
    return (a[:, :, :, None] + b[:, :, None, :]).astype(x.dtype)


if __name__ == "__main__":
    # Small shapes consistent with the module: batch=2, in_planes=4, planes=8, roi_num=16
    N, C, P, d = 2, 4, 8, 16

    key = jax.random.PRNGKey(0)
    kx, kw1, kb1, kw2, kb2 = jax.random.split(key, 5)

    x = jax.random.normal(kx, (N, C, d, d), dtype=jnp.float32)

    # Deterministic Conv2d-style init (uniform in +/- 1/sqrt(fan_in)).
    bound1 = 1.0 / jnp.sqrt(jnp.float32(C * 1 * d))
    bound2 = 1.0 / jnp.sqrt(jnp.float32(C * d * 1))
    w1 = jax.random.uniform(kw1, (P, C, 1, d), jnp.float32, -bound1, bound1)
    b1 = jax.random.uniform(kb1, (P,), jnp.float32, -bound1, bound1)
    w2 = jax.random.uniform(kw2, (P, C, d, 1), jnp.float32, -bound2, bound2)
    b2 = jax.random.uniform(kb2, (P,), jnp.float32, -bound2, bound2)

    out = jax.block_until_ready(e2e_block(x, w1, b1, w2, b2))
    assert out.shape == (N, P, d, d)

    # Tight check vs a reference that reproduces the kernel's bf16 arithmetic.
    ref_mimic = e2e_block_reference(x, w1, b1, w2, b2, mimic_kernel=True)
    assert jnp.allclose(out, ref_mimic, atol=2e-3, rtol=2e-3), "mismatch vs bf16-mimic reference"
    # Looser sanity check vs the exact f32 reference (bf16 operand rounding only).
    ref_f32 = e2e_block_reference(x, w1, b1, w2, b2)
    assert jnp.allclose(out, ref_f32, atol=1e-1, rtol=1e-2), "mismatch vs f32 reference"

    print("KERNEL_OK")
</pallas_src>

<mosaic_0001>
module attributes {stable_mosaic.version = 11 : i64} {
  func.func @kernel(%arg0: i32, %arg1: memref<1x128x32xbf16, #tpu.memory_space<vmem>>, %arg2: memref<16x128xbf16, #tpu.memory_space<vmem>>, %arg3: memref<16x256xbf16, #tpu.memory_space<vmem>>, %arg4: memref<16x256xbf16, #tpu.memory_space<vmem>>, %arg5: memref<8x1xf32, #tpu.memory_space<vmem>>, %arg6: memref<2x8x256xf32, #tpu.memory_space<vmem>>) attributes {dimension_semantics = [#tpu.dimension_semantics<arbitrary>], iteration_bounds = array<i64: 1>, scalar_prefetch = 0 : i64, scratch_operands = 0 : i64, tpu.core_type = #tpu.core_type<tc>, window_params = [{transform_indices = @transform_0, window_bounds = array<i64: 1, 128, 32>}, {pipeline_mode = #tpu.pipeline_mode<synchronous>, transform_indices = @transform_1, window_bounds = array<i64: 16, 128>}, {pipeline_mode = #tpu.pipeline_mode<synchronous>, transform_indices = @transform_2, window_bounds = array<i64: 16, 256>}, {pipeline_mode = #tpu.pipeline_mode<synchronous>, transform_indices = @transform_3, window_bounds = array<i64: 16, 256>}, {pipeline_mode = #tpu.pipeline_mode<synchronous>, transform_indices = @transform_4, window_bounds = array<i64: 8, 1>}, {transform_indices = @transform_5, window_bounds = array<i64: 2, 8, 256>}]} {
    %c0 = arith.constant 0 : index
    %c0_0 = arith.constant 0 : index
    %0 = vector.load %arg2[%c0, %c0_0] : memref<16x128xbf16, #tpu.memory_space<vmem>>, vector<16x128xbf16>
    %c0_1 = arith.constant 0 : index
    %c0_2 = arith.constant 0 : index
    %c0_3 = arith.constant 0 : index
    %1 = vector.load %arg1[%c0_1, %c0_2, %c0_3] : memref<1x128x32xbf16, #tpu.memory_space<vmem>>, vector<1x128x32xbf16>
    %2 = vector.shape_cast %1 : vector<1x128x32xbf16> to vector<128x32xbf16>
    %cst = arith.constant dense<0.000000e+00> : vector<16x32xf32>
    %3 = tpu.matmul %0, %2, %cst {dimension_numbers = #tpu.dot_dimension_numbers<[1], [0], [0], [1], [0, 0, 1, 1], [], []>} : vector<16x128xbf16>, vector<128x32xbf16>, vector<16x32xf32> -> vector<16x32xf32>
    %4 = vector.extract_strided_slice %3 {offsets = [0, 0], sizes = [8, 32], strides = [1, 1]} : vector<16x32xf32> to vector<8x32xf32>
    %c0_4 = arith.constant 0 : index
    %c0_5 = arith.constant 0 : index
    %5 = vector.load %arg5[%c0_4, %c0_5] : memref<8x1xf32, #tpu.memory_space<vmem>>, vector<8x1xf32>
    %6 = vector.broadcast %5 : vector<8x1xf32> to vector<8x32xf32>
    %7 = arith.addf %4, %6 : vector<8x32xf32>
    %8 = arith.truncf %7 : vector<8x32xf32> to vector<8x32xbf16>
    %9 = vector.extract_strided_slice %3 {offsets = [8, 0], sizes = [8, 32], strides = [1, 1]} : vector<16x32xf32> to vector<8x32xf32>
    %10 = arith.truncf %9 : vector<8x32xf32> to vector<8x32xbf16>
    %11 = vector.extract_strided_slice %8 {offsets = [0, 0], sizes = [8, 16], strides = [1, 1]} : vector<8x32xbf16> to vector<8x16xbf16>
    %12 = vector.extract_strided_slice %10 {offsets = [0, 0], sizes = [8, 16], strides = [1, 1]} : vector<8x32xbf16> to vector<8x16xbf16>
    %c0_6 = arith.constant 0 : index
    %c0_7 = arith.constant 0 : index
    %13 = vector.load %arg3[%c0_6, %c0_7] : memref<16x256xbf16, #tpu.memory_space<vmem>>, vector<16x256xbf16>
    %cst_8 = arith.constant dense<0.000000e+00> : vector<8x256xf32>
    %14 = tpu.matmul %11, %13, %cst_8 {dimension_numbers = #tpu.dot_dimension_numbers<[1], [0], [0], [1], [0, 0, 1, 1], [], []>} : vector<8x16xbf16>, vector<16x256xbf16>, vector<8x256xf32> -> vector<8x256xf32>
    %c0_9 = arith.constant 0 : index
    %c0_10 = arith.constant 0 : index
    %15 = vector.load %arg4[%c0_9, %c0_10] : memref<16x256xbf16, #tpu.memory_space<vmem>>, vector<16x256xbf16>
    %cst_11 = arith.constant dense<0.000000e+00> : vector<8x256xf32>
    %16 = tpu.matmul %12, %15, %cst_11 {dimension_numbers = #tpu.dot_dimension_numbers<[1], [0], [0], [1], [0, 0, 1, 1], [], []>} : vector<8x16xbf16>, vector<16x256xbf16>, vector<8x256xf32> -> vector<8x256xf32>
    %17 = arith.addf %14, %16 : vector<8x256xf32>
    %c0_12 = arith.constant 0 : index
    %c0_13 = arith.constant 0 : index
    %c0_14 = arith.constant 0 : index
    %18 = vector.load %arg6[%c0_12, %c0_13, %c0_14] : memref<2x8x256xf32, #tpu.memory_space<vmem>>, vector<1x8x256xf32>
    %19 = vector.shape_cast %18 : vector<1x8x256xf32> to vector<8x256xf32>
    %20 = vector.shape_cast %17 : vector<8x256xf32> to vector<1x8x256xf32>
    tpu.vector_store %arg6[%c0_12, %c0_13, %c0_14], %20 {strides = array<i32>} : memref<2x8x256xf32, #tpu.memory_space<vmem>>, vector<1x8x256xf32>,
    %21 = vector.extract_strided_slice %8 {offsets = [0, 16], sizes = [8, 16], strides = [1, 1]} : vector<8x32xbf16> to vector<8x16xbf16>
    %22 = vector.extract_strided_slice %10 {offsets = [0, 16], sizes = [8, 16], strides = [1, 1]} : vector<8x32xbf16> to vector<8x16xbf16>
    %c0_15 = arith.constant 0 : index
    %c0_16 = arith.constant 0 : index
    %23 = vector.load %arg3[%c0_15, %c0_16] : memref<16x256xbf16, #tpu.memory_space<vmem>>, vector<16x256xbf16>
    %cst_17 = arith.constant dense<0.000000e+00> : vector<8x256xf32>
    %24 = tpu.matmul %21, %23, %cst_17 {dimension_numbers = #tpu.dot_dimension_numbers<[1], [0], [0], [1], [0, 0, 1, 1], [], []>} : vector<8x16xbf16>, vector<16x256xbf16>, vector<8x256xf32> -> vector<8x256xf32>
    %c0_18 = arith.constant 0 : index
    %c0_19 = arith.constant 0 : index
    %25 = vector.load %arg4[%c0_18, %c0_19] : memref<16x256xbf16, #tpu.memory_space<vmem>>, vector<16x256xbf16>
    %cst_20 = arith.constant dense<0.000000e+00> : vector<8x256xf32>
    %26 = tpu.matmul %22, %25, %cst_20 {dimension_numbers = #tpu.dot_dimension_numbers<[1], [0], [0], [1], [0, 0, 1, 1], [], []>} : vector<8x16xbf16>, vector<16x256xbf16>, vector<8x256xf32> -> vector<8x256xf32>
    %27 = arith.addf %24, %26 : vector<8x256xf32>
    %c1 = arith.constant 1 : index
    %c0_21 = arith.constant 0 : index
    %c0_22 = arith.constant 0 : index
    %28 = vector.load %arg6[%c1, %c0_21, %c0_22] : memref<2x8x256xf32, #tpu.memory_space<vmem>>, vector<1x8x256xf32>
    %29 = vector.shape_cast %28 : vector<1x8x256xf32> to vector<8x256xf32>
    %30 = vector.shape_cast %27 : vector<8x256xf32> to vector<1x8x256xf32>
    tpu.vector_store %arg6[%c1, %c0_21, %c0_22], %30 {strides = array<i32>} : memref<2x8x256xf32, #tpu.memory_space<vmem>>, vector<1x8x256xf32>,
    return
  }
  func.func @transform_0(%arg0: i32) -> (i32, i32, i32) {
    %c0_i32 = arith.constant 0 : i32
    %c0_i32_0 = arith.constant 0 : i32
    %c0_i32_1 = arith.constant 0 : i32
    return %arg0, %c0_i32, %c0_i32_0 : i32, i32, i32
  }
  func.func @transform_1(%arg0: i32) -> (i32, i32) {
    %c0_i32 = arith.constant 0 : i32
    %c0_i32_0 = arith.constant 0 : i32
    %c0_i32_1 = arith.constant 0 : i32
    return %c0_i32, %c0_i32_0 : i32, i32
  }
  func.func @transform_2(%arg0: i32) -> (i32, i32) {
    %c0_i32 = arith.constant 0 : i32
    %c0_i32_0 = arith.constant 0 : i32
    %c0_i32_1 = arith.constant 0 : i32
    return %c0_i32, %c0_i32_0 : i32, i32
  }
  func.func @transform_3(%arg0: i32) -> (i32, i32) {
    %c0_i32 = arith.constant 0 : i32
    %c0_i32_0 = arith.constant 0 : i32
    %c0_i32_1 = arith.constant 0 : i32
    return %c0_i32, %c0_i32_0 : i32, i32
  }
  func.func @transform_4(%arg0: i32) -> (i32, i32) {
    %c0_i32 = arith.constant 0 : i32
    %c0_i32_0 = arith.constant 0 : i32
    %c0_i32_1 = arith.constant 0 : i32
    return %c0_i32, %c0_i32_0 : i32, i32
  }
  func.func @transform_5(%arg0: i32) -> (i32, i32, i32) {
    %c0_i32 = arith.constant 0 : i32
    %c0_i32_0 = arith.constant 0 : i32
    %c0_i32_1 = arith.constant 0 : i32
    return %arg0, %c0_i32, %c0_i32_0 : i32, i32, i32
  }
}

</mosaic_0001>

<bundles_post_ra>
// kernel: tpu_custom_call.1
= control target key start
LH: loop header
LB: loop body
LE: loop exit
PB: predicated region body
PF: predicated region fallthrough
CT: control target
= control target key end

     0   :  { %v501_v1 = vmov 0.0   ;;  %vm502_vm0 = vmmov 0   ;;  %v503_v3 = vmov 0   ;;  %s596_s0 = inlined_call_operand.vmem [shape: bf16[1,128,32], index: 0, kind: input, shape index: {}]   ;;  %s597_s1 = inlined_call_operand.vmem [shape: bf16[16,128], index: 1, kind: input, shape index: {}]   ;;  %s598_s2 = inlined_call_operand.vmem [shape: bf16[16,256], index: 2, kind: input, shape index: {}]   ;;  %s599_s3 = inlined_call_operand.vmem [shape: bf16[16,256], index: 3, kind: input, shape index: {}]   ;;  %s600_s4 = inlined_call_operand.vmem [shape: f32[8,1], index: 4, kind: input, shape index: {}]   ;;  %s601_s5 = inlined_call_operand.hbm [shape: f32[2,8,256], index: 5, kind: output, shape index: {}]  }
   0x1   :  { %v462_v0 = vld [vmem:[%s596_s0] sm:$0xff]   ;;  %426 = vmatprep.subr.bf16.mxu0 %v501_v1  ;;  %v463_v2 = vld [vmem:[%s596_s0 + $0x8] sm:$0xff]   ;;  %442 = vmatprep.mubr.msk.bf16.mxu0 %vm502_vm0, %v501_v1  ;;  %v464_v4 = vld [vmem:[%s596_s0 + $0x10] sm:$0xff]  }
   0x2   :  { %427 = vmatpush3.bf16.msra.mxu0 %v462_v0  ;;  %461 = vset.pattern.permute.xlu0 %v503_v3  ;;  %v465_v5 = vld [vmem:[%s596_s0 + $0x18] sm:$0xff]   ;;  %v135_v6 = vld [vmem:[%s600_s4] sm:$0xff] }
   0x3   :  { %428 = vmatprep.subr.bf16.mxu0 %v501_v1  ;;  %194 = vmatprep.mubr.bf16.mxu1 %v503_v3 }
   0x4   :  { %138 = vperm.xlu0 %461, %v135_v6  }
   0x6   :  { %429 = vmatpush3.bf16.msra.mxu0 %v463_v2 }
   0x7   :  { %430 = vmatprep.subr.bf16.mxu0 %v501_v1 }
   0xa   :  { %431 = vmatpush3.bf16.msra.mxu0 %v464_v4 }
   0xb   :  { %10 = vsyncpa [#allocation3], 0  ;;  %432 = vmatprep.subr.bf16.mxu0 %v501_v1  ;;  %v466_v7 = vld [vmem:[%s596_s0 + $0x20] sm:$0xff]   ;;  %v467_v8 = vld [vmem:[%s596_s0 + $0x28] sm:$0xff]   ;;  %vm158_vm1 = vcmask 130048  }
   0xc   :  { %v468_v9 = vld [vmem:[%s596_s0 + $0x30] sm:$0xff]   ;;  %v469_v10 = vld [vmem:[%s596_s0 + $0x38] sm:$0xff]   ;;  %v470_v11 = vld [vmem:[%s597_s1] sm:$0xff]  }
   0xd   :  { %v471_v12 = vld [vmem:[%s599_s3 + $0x4] ss:$8 sps:$4 sm:$0xff]   ;;  %v473_v13 = vld [vmem:[%s599_s3] ss:$8 sps:$4 sm:$0xff]   ;;  %s504_s3 = smov 112  }
   0xe   :  { %433 = vmatpush3.bf16.msra.mxu0 %v465_v5  ;;  %162 = vmatprep.subr.bf16.mxu1 %v471_v12  ;;  %v476_v14 = vld [vmem:[%s598_s2 + $0x4] ss:$8 sps:$4 sm:$0xff]   ;;  %v474_v23 = vld [vmem:[%s598_s2] ss:$8 sps:$4 sm:$0xff]   ;;  %s505_s2 = smov [#allocation2]  }
   0xf   :  { %434 = vmatprep.subr.bf16.mxu0 %v501_v1  ;;  %163 = vmatpush1.bf16.msra.mxu1 %v473_v13  ;;  %s385_s18 = sshll.u32 %s505_s2, 4  ;;  %s386_s18 = int_to_ptr.vmem [resolvable:$true] %s385_s18 }
  0x10   :  { %216 = vmatprep.subr.bf16.mxu1 %v476_v14  ;;  %s477_s19 = scalar_lea.vmem %s386_s18, 512  ;;  %p482_p1 = scmp.lt.s32.totalorder %s386_s18, %s386_s18 }
  0x11   :  { %p478_p0 = scmp.ne.s32.totalorder %s386_s18, %s477_s19  ;;  %p483_p2 = scmp.lt.s32.totalorder %s477_s19, %s477_s19 }
  0x12   :  { %435 = vmatpush3.bf16.msra.mxu0 %v466_v7 }
  0x13   :  { %436 = vmatprep.subr.bf16.mxu0 %v501_v1  ;;  %p484_p3 = por %p483_p2, %p482_p1 }
  0x15   :  { %p485_p4 = pnand %p484_p3, %p478_p0 }
  0x16   :  { %437 = vmatpush3.bf16.msra.mxu0 %v467_v8 }
  0x17   :  { %438 = vmatprep.subr.bf16.mxu0 %v501_v1 }
  0x1a   :  { %439 = vmatpush3.bf16.msra.mxu0 %v468_v9 }
  0x1b   :  { %440 = vmatprep.subr.bf16.mxu0 %v501_v1 }
  0x1e   :  { %441 = vmatpush3.bf16.msra.mxu0 %v469_v10 }
  0x21   :  { %443 = vmatmul.mubr.bf16.vlgmr.msra.gmra.mrb[0].mxu0 %v470_v11 }
  0x83   :  { %v139_v15 = vpop.permute.xlu0 %138 }
  0xf4   :  { %v128_v16 = vpop.f32.mrb[0].mxu0 }
  0xf5   :  { %v141_v17 = vadd.f32 %v139_v15, %v128_v16  ;;  %v444_v18 = vpop.f32.mrb[1].mxu0 }
  0xf6   :  { %v131_v19 = vpop.f32.mrb[2].mxu0 }
  0xf7   :  { %v142_v20 = vpack.c.bf16 %v141_v17, %v141_v17  ;;  %v143_v21 = vpack.c.bf16 %v131_v19, %v131_v19  ;;  %v445_v22 = vpop.f32.mrb[3].mxu0 }
  0xf9   :  { %321 = vrot.lane.b32.xlu1 %v142_v20, %s504_s3  ;;  %264 = vrot.lane.b32.xlu0 %v143_v21, %s504_s3 }
  0xfa   :  { %407 = vmatmul.mubr.msk.bf16.vlgmr.msra.gmra.mrb[0].mxu1 %vm158_vm1, %v143_v21 }
  0xfb   :  { %217 = vmatpush1.bf16.msra.mxu1 %v474_v23  ;;  %248 = vmatprep.mubr.bf16.mxu1 %v503_v3 }
  0xfc   :  { %279 = vmatprep.subr.bf16.mxu1 %v471_v12 }
 0x106   :  { %410 = vmatmul.mubr.msk.bf16.vlgmr.msra.gmra.mrb[0].mxu1 %vm158_vm1, %v142_v20 }
 0x107   :  { %280 = vmatpush1.bf16.msra.mxu1 %v473_v13  ;;  %311 = vmatprep.mubr.bf16.mxu1 %v503_v3 }
 0x108   :  { %336 = vmatprep.subr.bf16.mxu1 %v476_v14 }
 0x16b   :  { %v265_v24 = vpop.permute.xlu0 %264  ;;  %v322_v25 = vpop.permute.xlu1 %321 }
 0x16c   :  { %413 = vmatmul.mubr.msk.bf16.vlgmr.msra.gmra.mrb[4].mxu1 %vm158_vm1, %v265_v24 }
 0x16d   :  { %337 = vmatpush1.bf16.msra.mxu1 %v474_v23  ;;  %368 = vmatprep.mubr.bf16.mxu1 %v503_v3 }
 0x178   :  { %416 = vmatmul.mubr.msk.bf16.vlgmr.msra.gmra.mrb[4].mxu1 %vm158_vm1, %v322_v25 }
 0x1d9   :  { %v250_v26 = vpop.f32.mrb[0].mxu1 }
 0x1da   :  { %257 = vst [vmem:[#allocation2] sm:$0xff] %v250_v26  ;;  %v252_v27 = vpop.f32.mrb[1].mxu1 }
 0x1db   :  { %258 = vst [vmem:[#allocation2 + $0x8] sm:$0xff] %v252_v27  ;;  %v254_v28 = vpop.f32.mrb[2].mxu1 }
 0x1dc   :  { %v255_v29 = vpop.f32.mrb[3].mxu1 }
 0x24b   :  { %v370_v30 = vpop.f32.mrb[4].mxu1 }
 0x24c   :  { %378 = vst [vmem:[#allocation2 + $0x10] sm:$0xff] %v370_v30  ;;  %v372_v31 = vpop.f32.mrb[5].mxu1 }
 0x24d   :  { %379 = vst [vmem:[#allocation2 + $0x18] sm:$0xff] %v372_v31  ;;  %v374_v32 = vpop.f32.mrb[6].mxu1 }
 0x24e   :  { %v375_v33 = vpop.f32.mrb[7].mxu1 }
 0x24f   :  { %488 = shalt.err (!%p485_p4)
}
 0x250   :  { %s489_s22 = scalar_lea.hbm %s601_s5, 512 }
 0x251   :  { %p490_p5 = scmp.ne.s32.totalorder %s601_s5, %s489_s22  ;;  %p493_p6 = scmp.lt.u32.totalorder %s489_s22, %s601_s5 }
 0x253   :  { %p495_p7 = pnand %p493_p6, %p490_p5 }
 0x255   :  { %498 = shalt.err (!%p495_p7)
}
 0x256   :  { %s506_s27 = smov 256   ;;  %s507_s28 = smov 16  }
 0x257   :  { %391 = dma.vmem_to_hbm [thread:$0]  %s386_s18, 512, %s601_s5, [#allocation3], %s506_s27, %s506_s27, %s507_s28  }
 0x258   :  { %499 = dma.done.wait [#allocation3], 512  }
 0x259   :  { %500 = vsyncadd [#allocation3], 4294966784 }
 0x25a   :  { %395 = vsyncpa [#allocation3], 1 }

</bundles_post_ra>
